<compile_context>
chip_gen: v7x
topology: tpu7x:2x2x1
jax: 0.10.0
libtpu: 0.0.40
codegen_flags: <defaults>
</compile_context>

<pallas_src>
import functools

import jax
import jax.numpy as jnp
import numpy as np
from jax import lax
from jax.experimental import pallas as pl
from jax.experimental.pallas import tpu as pltpu


def _fused_loss_kernel(inv_b,
                       pred_ref, tgt_ref, aux_ref, real_ref, hnoise_ref,
                       w1_ref, w2_ref, gram_ref,
                       out_ref, acc_ref):
    """One batch tile of the fused loss; accumulates into a resident VMEM scalar."""
    step = pl.program_id(0)

    @pl.when(step == 0)
    def _init():
        acc_ref[...] = jnp.zeros_like(acc_ref)

    # ---------- weighted NLL partial:  sum_i mask_i * w_i * (-pred[i, t_i]) ----------
    pred = pred_ref[...]                                   # (tb, C) f32 log-probs
    tgt = tgt_ref[...]                                     # (tb, 1) i32
    aux = aux_ref[...]                                     # (tb, 3) f32 [alpha, weight, mask]
    alpha = aux[:, 0:1]
    w = aux[:, 1:2]
    mask = aux[:, 2:3]
    tb, C = pred.shape
    cols = lax.broadcasted_iota(jnp.int32, (tb, C), 1)
    picked = jnp.where(cols == tgt, pred, 0.0)             # select, no onehot cast/mul
    nll = -jnp.sum(picked, axis=1, keepdims=True)          # (tb, 1) = -pred[i, t_i]
    nll_part = jnp.sum(nll * w * mask, keepdims=True)      # (1, 1)

    # ---------- gradient penalty partial (interpolation hoisted to H-space) ----------
    # x = alpha*real + (1-alpha)*noise  =>  x@W1 = alpha*(real@W1) + (1-alpha)*h_noise
    h_real = jnp.dot(real_ref[...].astype(jnp.bfloat16), w1_ref[...],
                     preferred_element_type=jnp.float32)   # (tb, Hp) MXU, f32 accumulate
    h = alpha * h_real + (1.0 - alpha) * hnoise_ref[...]   # f32 VPU
    t = jnp.tanh(h)                                        # f32 EUP
    s = (1.0 - t * t) * w2_ref[...]                        # (tb, Hp); 0 on padded lanes
    # dD/dx_i = s_i @ W1^T  =>  ||dD/dx_i||^2 = s_i (W1^T W1) s_i^T = sum_h s * (s @ G)
    sg = jnp.dot(s, gram_ref[...], preferred_element_type=jnp.float32)  # f32 (accuracy)
    sq_norm = jnp.sum(s * sg, axis=1, keepdims=True)       # (tb, 1)
    norm = jnp.sqrt(jnp.maximum(sq_norm, 0.0))
    gp_part = jnp.sum(((norm - 1.0) ** 2) * mask, keepdims=True)        # (1, 1)

    acc_ref[...] += nll_part + gp_part

    @pl.when(step == pl.num_programs(0) - 1)
    def _finalize():
        out_ref[...] = acc_ref[...] * inv_b


def _pick_tile_b(B, D):
    """Tile rows so one f32 (tile_b, D) real block is ~4 MiB (double-buffer safe on
    v7x 64 MiB / v5e 16 MiB scoped VMEM); prefer multiples of 256 (v6e/v7x MXU rows)."""
    bytes_per_row = max(D, 128) * 4
    t = min(1024, max(8, (4 * 1024 * 1024) // bytes_per_row), max(8, B))
    if t >= 256:
        t = (t // 256) * 256
    else:
        t = max(8, (t // 8) * 8)
    return t


def get_loss(pred, target, trans_feat, real_data, disc_params, rng_key, tile_b=None):
    """total_loss = WeightedNLLLoss(pred, target, trans_feat) + GradientPenalty(real_data, D)."""
    w1, w2, fixed_noise = disc_params
    B = real_data.shape[0]
    C = pred.shape[1]

    real_flat = real_data.reshape(B, -1).astype(jnp.float32)
    noise_flat = fixed_noise.reshape(B, -1).astype(jnp.float32)
    D = real_flat.shape[1]
    H = w1.shape[1]
    Hp = 128 * max(1, pl.cdiv(H, 128))                     # lane-dense, no over-padding

    # One-time prep outside the kernel: pad hidden dim, Gram matrix, noise hidden state.
    w1_pad = jnp.zeros((D, Hp), jnp.float32).at[:, :H].set(w1.astype(jnp.float32))
    w2_pad = jnp.zeros((1, Hp), jnp.float32).at[:, :H].set(w2.astype(jnp.float32))
    gram = w1_pad.T @ w1_pad                               # (Hp, Hp) f32, zero on padding
    w1_bf = w1_pad.astype(jnp.bfloat16)                    # MXU feed for the big matmul
    h_noise = noise_flat @ w1_pad                          # (B, Hp) f32, fixed_noise is const

    # alpha = torch.randn(B, 1, 1, 1) -> (B, 1) in flattened feature layout
    alpha = jax.random.normal(rng_key, (B, 1), dtype=jnp.float32)

    if tile_b is None:
        tile_b = _pick_tile_b(B, D)
    Bp = pl.cdiv(B, tile_b) * tile_b
    pad = Bp - B

    pred_f = pred.astype(jnp.float32)
    tgt_i = target.reshape(B, 1).astype(jnp.int32)
    # coalesce tiny per-row operands into one (B, 3) array: [alpha, weight, valid-mask]
    aux = jnp.concatenate(
        [alpha, trans_feat.reshape(B, 1).astype(jnp.float32), jnp.ones((B, 1), jnp.float32)],
        axis=1)

    if pad:
        pred_f = jnp.pad(pred_f, ((0, pad), (0, 0)))
        tgt_i = jnp.pad(tgt_i, ((0, pad), (0, 0)))
        aux = jnp.pad(aux, ((0, pad), (0, 0)))             # mask = 0 on padded rows
        real_flat = jnp.pad(real_flat, ((0, pad), (0, 0)))
        h_noise = jnp.pad(h_noise, ((0, pad), (0, 0)))

    grid = (Bp // tile_b,)

    flops = (2 * Bp * D * Hp          # real @ W1
             + 2 * Bp * Hp * Hp       # s @ G
             + 8 * Bp * Hp            # interpolation in H-space, s, s*sg, reductions
             + 4 * Bp * C + 8 * Bp)   # nll select/reduce + norm/penalty
    bytes_accessed = ((pred_f.size + tgt_i.size + aux.size + real_flat.size
                       + h_noise.size + w2_pad.size + gram.size) * 4
                      + w1_bf.size * 2 + 4)

    block_in_bytes = tile_b * (C + 1 + 3 + D + Hp) * 4
    weight_bytes = D * Hp * 2 + Hp * Hp * 4 + Hp * 4
    interm_bytes = 6 * tile_b * Hp * 4 + tile_b * D * 2
    vmem_limit = int(min(40 * 1024 * 1024,
                         max(16 * 1024 * 1024,
                             2 * block_in_bytes + 2 * weight_bytes + interm_bytes
                             + (2 << 20))))

    out = pl.pallas_call(
        functools.partial(_fused_loss_kernel, 1.0 / B),
        out_shape=jax.ShapeDtypeStruct((1, 1), jnp.float32),
        grid=grid,
        in_specs=[
            pl.BlockSpec((tile_b, C), lambda i: (i, 0)),     # pred
            pl.BlockSpec((tile_b, 1), lambda i: (i, 0)),     # target
            pl.BlockSpec((tile_b, 3), lambda i: (i, 0)),     # [alpha, weight, mask]
            pl.BlockSpec((tile_b, D), lambda i: (i, 0)),     # real (dominant HBM stream)
            pl.BlockSpec((tile_b, Hp), lambda i: (i, 0)),    # h_noise = noise @ W1
            pl.BlockSpec((D, Hp), lambda i: (0, 0)),         # W1 (bf16), resident
            pl.BlockSpec((1, Hp), lambda i: (0, 0)),         # w2, resident
            pl.BlockSpec((Hp, Hp), lambda i: (0, 0)),        # Gram = W1^T W1 (f32), resident
        ],
        out_specs=pl.BlockSpec((1, 1), lambda i: (0, 0)),
        scratch_shapes=[pltpu.VMEM((1, 1), jnp.float32)],    # running (nll+gp) sum
        compiler_params=pltpu.CompilerParams(
            dimension_semantics=("arbitrary",),              # batch axis is a reduction
            vmem_limit_bytes=vmem_limit),
        cost_estimate=pl.CostEstimate(
            flops=flops,
            transcendentals=Bp * Hp + Bp,                    # tanh + sqrt
            bytes_accessed=bytes_accessed),
    )(pred_f, tgt_i, aux, real_flat, h_noise, w1_bf, w2_pad, gram)
    return out[0, 0]


def _reference_loss(pred, target, trans_feat, real_data, disc_params, rng_key):
    """Pure-JAX f32 reference with identical semantics (for correctness check)."""
    w1, w2, fixed_noise = disc_params
    B = real_data.shape[0]
    nll = -jnp.take_along_axis(pred, target.reshape(B, 1).astype(jnp.int32), axis=1)[:, 0]
    nll_loss = jnp.mean(nll * trans_feat)

    alpha = jax.random.normal(rng_key, (B, 1), dtype=jnp.float32)
    x = alpha * real_data.reshape(B, -1) + (1.0 - alpha) * fixed_noise.reshape(B, -1)
    h = x @ w1
    t = jnp.tanh(h)
    s = (1.0 - t * t) * w2                                  # (B, H)
    grads = s @ w1.T                                        # (B, D) = dD/dx
    gp = jnp.mean((jnp.linalg.norm(grads, axis=1) - 1.0) ** 2)
    return nll_loss + gp


if __name__ == "__main__":
    key = jax.random.PRNGKey(0)
    kp, kt, kw, kr, kn, k1, k2, ka = jax.random.split(key, 8)

    B, C = 28, 16                  # batch, num classes (B=28 exercises padding + mask)
    real_shape = (B, 4, 8, 8)      # NCHW-style real data -> D = 256 when flattened
    D = 4 * 8 * 8
    H = 32                         # synthetic discriminator hidden width

    logits = jax.random.normal(kp, (B, C), dtype=jnp.float32)
    pred = jax.nn.log_softmax(logits, axis=-1)              # log-probs (PointNet cls head)
    target = jax.random.randint(kt, (B,), 0, C, dtype=jnp.int32)
    trans_feat = jax.random.uniform(kw, (B,), dtype=jnp.float32)   # per-sample weights

    real_data = jax.random.normal(kr, real_shape, dtype=jnp.float32)
    fixed_noise = jax.random.normal(kn, real_shape, dtype=jnp.float32)

    # deterministic synthetic discriminator parameters
    w1 = jax.random.normal(k1, (D, H), dtype=jnp.float32) * 0.1
    w2 = jax.random.normal(k2, (1, H), dtype=jnp.float32) * 0.1

    # tile_b=8 forces a multi-step grid at this small B (4 steps + padded tail).
    loss = get_loss(pred, target, trans_feat, real_data, (w1, w2, fixed_noise), ka, tile_b=8)
    loss = jax.block_until_ready(loss)

    ref = jax.block_until_ready(
        _reference_loss(pred, target, trans_feat, real_data, (w1, w2, fixed_noise), ka))
    np.testing.assert_allclose(float(loss), float(ref), rtol=1e-2, atol=1e-3)
    print("KERNEL_OK")
</pallas_src>

<mosaic_0001>
module attributes {stable_mosaic.version = 11 : i64} {
  func.func @_fused_loss_kernel(%arg0: i32, %arg1: memref<8x16xf32, #tpu.memory_space<vmem>>, %arg2: memref<8x1xi32, #tpu.memory_space<vmem>>, %arg3: memref<8x3xf32, #tpu.memory_space<vmem>>, %arg4: memref<8x256xf32, #tpu.memory_space<vmem>>, %arg5: memref<8x128xf32, #tpu.memory_space<vmem>>, %arg6: memref<256x128xbf16, #tpu.memory_space<vmem>>, %arg7: memref<1x128xf32, #tpu.memory_space<vmem>>, %arg8: memref<128x128xf32, #tpu.memory_space<vmem>>, %arg9: memref<1x1xf32, #tpu.memory_space<vmem>>, %arg10: memref<1x1xf32, #tpu.memory_space<vmem>>) attributes {dimension_semantics = [#tpu.dimension_semantics<arbitrary>], iteration_bounds = array<i64: 4>, scalar_prefetch = 0 : i64, scratch_operands = 1 : i64, tpu.core_type = #tpu.core_type<tc>, window_params = [{transform_indices = @transform_0, window_bounds = array<i64: 8, 16>}, {transform_indices = @transform_1, window_bounds = array<i64: 8, 1>}, {transform_indices = @transform_2, window_bounds = array<i64: 8, 3>}, {transform_indices = @transform_3, window_bounds = array<i64: 8, 256>}, {transform_indices = @transform_4, window_bounds = array<i64: 8, 128>}, {pipeline_mode = #tpu.pipeline_mode<synchronous>, transform_indices = @transform_5, window_bounds = array<i64: 256, 128>}, {pipeline_mode = #tpu.pipeline_mode<synchronous>, transform_indices = @transform_6, window_bounds = array<i64: 1, 128>}, {pipeline_mode = #tpu.pipeline_mode<synchronous>, transform_indices = @transform_7, window_bounds = array<i64: 128, 128>}, {pipeline_mode = #tpu.pipeline_mode<synchronous>, transform_indices = @transform_8, window_bounds = array<i64: 1, 1>}]} {
    %c0_i32 = arith.constant 0 : i32
    %0 = arith.cmpi eq, %arg0, %c0_i32 : i32
    %1 = arith.extui %0 : i1 to i32
    %c0_i32_0 = arith.constant 0 : i32
    %2 = arith.cmpi ne, %1, %c0_i32_0 : i32
    scf.if %2 {
      %cst_32 = arith.constant 0.000000e+00 : f32
      %68 = vector.broadcast %cst_32 : f32 to vector<1x1xf32>
      %c0_33 = arith.constant 0 : index
      %c0_34 = arith.constant 0 : index
      %69 = vector.load %arg10[%c0_33, %c0_34] : memref<1x1xf32, #tpu.memory_space<vmem>>, vector<1x1xf32>
      tpu.vector_store %arg10[%c0_33, %c0_34], %68 {strides = array<i32>} : memref<1x1xf32, #tpu.memory_space<vmem>>, vector<1x1xf32>,
    } else {
    }
    %c0 = arith.constant 0 : index
    %c0_1 = arith.constant 0 : index
    %3 = vector.load %arg1[%c0, %c0_1] : memref<8x16xf32, #tpu.memory_space<vmem>>, vector<8x16xf32>
    %c0_2 = arith.constant 0 : index
    %c0_3 = arith.constant 0 : index
    %4 = vector.load %arg2[%c0_2, %c0_3] : memref<8x1xi32, #tpu.memory_space<vmem>>, vector<8x1xi32>
    %c0_4 = arith.constant 0 : index
    %c0_5 = arith.constant 0 : index
    %5 = vector.load %arg3[%c0_4, %c0_5] : memref<8x3xf32, #tpu.memory_space<vmem>>, vector<8x3xf32>
    %6 = vector.extract_strided_slice %5 {offsets = [0, 0], sizes = [8, 1], strides = [1, 1]} : vector<8x3xf32> to vector<8x1xf32>
    %7 = vector.extract_strided_slice %5 {offsets = [0, 1], sizes = [8, 1], strides = [1, 1]} : vector<8x3xf32> to vector<8x1xf32>
    %8 = vector.extract_strided_slice %5 {offsets = [0, 2], sizes = [8, 1], strides = [1, 1]} : vector<8x3xf32> to vector<8x1xf32>
    %9 = tpu.iota {dimensions = array<i32: 1>} : vector<8x16xi32>
    %10 = vector.broadcast %4 : vector<8x1xi32> to vector<8x16xi32>
    %11 = arith.cmpi eq, %9, %10 : vector<8x16xi32>
    %cst = arith.constant 0.000000e+00 : f32
    %12 = vector.broadcast %cst : f32 to vector<8x16xf32>
    %13 = arith.select %11, %3, %12 : vector<8x16xi1>, vector<8x16xf32>
    %cst_6 = arith.constant dense<0.000000e+00> : vector<8xf32>
    %14 = vector.multi_reduction <add>, %13, %cst_6 [1] : vector<8x16xf32> to vector<8xf32>
    %15 = vector.shape_cast %14 : vector<8xf32> to vector<8x1xf32>
    %cst_7 = arith.constant 0.000000e+00 : f32
    %16 = vector.broadcast %cst_7 : f32 to vector<8x1xf32>
    %17 = arith.subf %16, %15 : vector<8x1xf32>
    %18 = arith.mulf %17, %7 : vector<8x1xf32>
    %19 = arith.mulf %18, %8 : vector<8x1xf32>
    %20 = vector.shape_cast %19 : vector<8x1xf32> to vector<1x8x1xf32>
    %cst_8 = arith.constant dense<0.000000e+00> : vector<1xf32>
    %21 = vector.multi_reduction <add>, %20, %cst_8 [1, 2] : vector<1x8x1xf32> to vector<1xf32>
    %22 = vector.shape_cast %21 : vector<1xf32> to vector<1x1x1xf32>
    %23 = vector.extract %22[0, 0, 0] : f32 from vector<1x1x1xf32>
    %24 = vector.broadcast %23 : f32 to vector<1x1xf32>
    %c0_9 = arith.constant 0 : index
    %c0_10 = arith.constant 0 : index
    %25 = vector.load %arg4[%c0_9, %c0_10] : memref<8x256xf32, #tpu.memory_space<vmem>>, vector<8x256xf32>
    %26 = arith.truncf %25 : vector<8x256xf32> to vector<8x256xbf16>
    %c0_11 = arith.constant 0 : index
    %c0_12 = arith.constant 0 : index
    %27 = vector.load %arg6[%c0_11, %c0_12] : memref<256x128xbf16, #tpu.memory_space<vmem>>, vector<256x128xbf16>
    %cst_13 = arith.constant dense<0.000000e+00> : vector<8x128xf32>
    %28 = tpu.matmul %26, %27, %cst_13 {dimension_numbers = #tpu.dot_dimension_numbers<[1], [0], [0], [1], [0, 0, 1, 1], [], []>} : vector<8x256xbf16>, vector<256x128xbf16>, vector<8x128xf32> -> vector<8x128xf32>
    %29 = vector.broadcast %6 : vector<8x1xf32> to vector<8x128xf32>
    %30 = arith.mulf %29, %28 : vector<8x128xf32>
    %cst_14 = arith.constant 1.000000e+00 : f32
    %31 = vector.broadcast %cst_14 : f32 to vector<8x1xf32>
    %32 = arith.subf %31, %6 : vector<8x1xf32>
    %c0_15 = arith.constant 0 : index
    %c0_16 = arith.constant 0 : index
    %33 = vector.load %arg5[%c0_15, %c0_16] : memref<8x128xf32, #tpu.memory_space<vmem>>, vector<8x128xf32>
    %34 = vector.broadcast %32 : vector<8x1xf32> to vector<8x128xf32>
    %35 = arith.mulf %34, %33 : vector<8x128xf32>
    %36 = arith.addf %30, %35 : vector<8x128xf32>
    %37 = math.tanh %36 : vector<8x128xf32>
    %38 = arith.mulf %37, %37 : vector<8x128xf32>
    %cst_17 = arith.constant 1.000000e+00 : f32
    %39 = vector.broadcast %cst_17 : f32 to vector<8x128xf32>
    %40 = arith.subf %39, %38 : vector<8x128xf32>
    %c0_18 = arith.constant 0 : index
    %c0_19 = arith.constant 0 : index
    %41 = vector.load %arg7[%c0_18, %c0_19] : memref<1x128xf32, #tpu.memory_space<vmem>>, vector<1x128xf32>
    %42 = vector.broadcast %41 : vector<1x128xf32> to vector<8x128xf32>
    %43 = arith.mulf %40, %42 : vector<8x128xf32>
    %c0_20 = arith.constant 0 : index
    %c0_21 = arith.constant 0 : index
    %44 = vector.load %arg8[%c0_20, %c0_21] : memref<128x128xf32, #tpu.memory_space<vmem>>, vector<128x128xf32>
    %cst_22 = arith.constant dense<0.000000e+00> : vector<8x128xf32>
    %45 = tpu.matmul %43, %44, %cst_22 {dimension_numbers = #tpu.dot_dimension_numbers<[1], [0], [0], [1], [0, 0, 1, 1], [], []>} : vector<8x128xf32>, vector<128x128xf32>, vector<8x128xf32> -> vector<8x128xf32>
    %46 = arith.mulf %43, %45 : vector<8x128xf32>
    %cst_23 = arith.constant dense<0.000000e+00> : vector<8xf32>
    %47 = vector.multi_reduction <add>, %46, %cst_23 [1] : vector<8x128xf32> to vector<8xf32>
    %48 = vector.shape_cast %47 : vector<8xf32> to vector<8x1xf32>
    %cst_24 = arith.constant 0.000000e+00 : f32
    %49 = vector.broadcast %cst_24 : f32 to vector<8x1xf32>
    %50 = arith.maximumf %48, %49 : vector<8x1xf32>
    %51 = math.sqrt %50 : vector<8x1xf32>
    %cst_25 = arith.constant 1.000000e+00 : f32
    %52 = vector.broadcast %cst_25 : f32 to vector<8x1xf32>
    %53 = arith.subf %51, %52 : vector<8x1xf32>
    %54 = arith.mulf %53, %53 : vector<8x1xf32>
    %55 = arith.mulf %54, %8 : vector<8x1xf32>
    %56 = vector.shape_cast %55 : vector<8x1xf32> to vector<1x8x1xf32>
    %cst_26 = arith.constant dense<0.000000e+00> : vector<1xf32>
    %57 = vector.multi_reduction <add>, %56, %cst_26 [1, 2] : vector<1x8x1xf32> to vector<1xf32>
    %58 = vector.shape_cast %57 : vector<1xf32> to vector<1x1x1xf32>
    %59 = vector.extract %58[0, 0, 0] : f32 from vector<1x1x1xf32>
    %60 = vector.broadcast %59 : f32 to vector<1x1xf32>
    %c0_27 = arith.constant 0 : index
    %c0_28 = arith.constant 0 : index
    %61 = vector.load %arg10[%c0_27, %c0_28] : memref<1x1xf32, #tpu.memory_space<vmem>>, vector<1x1xf32>
    %62 = arith.addf %24, %60 : vector<1x1xf32>
    %63 = arith.addf %61, %62 : vector<1x1xf32>
    %c0_29 = arith.constant 0 : index
    %c0_30 = arith.constant 0 : index
    %64 = vector.load %arg10[%c0_29, %c0_30] : memref<1x1xf32, #tpu.memory_space<vmem>>, vector<1x1xf32>
    tpu.vector_store %arg10[%c0_29, %c0_30], %63 {strides = array<i32>} : memref<1x1xf32, #tpu.memory_space<vmem>>, vector<1x1xf32>,
    %c3_i32 = arith.constant 3 : i32
    %65 = arith.cmpi eq, %arg0, %c3_i32 : i32
    %66 = arith.extui %65 : i1 to i32
    %c0_i32_31 = arith.constant 0 : i32
    %67 = arith.cmpi ne, %66, %c0_i32_31 : i32
    scf.if %67 {
      %c0_32 = arith.constant 0 : index
      %c0_33 = arith.constant 0 : index
      %68 = vector.load %arg10[%c0_32, %c0_33] : memref<1x1xf32, #tpu.memory_space<vmem>>, vector<1x1xf32>
      %cst_34 = arith.constant 0.0357142873 : f32
      %69 = vector.broadcast %cst_34 : f32 to vector<1x1xf32>
      %70 = arith.mulf %68, %69 : vector<1x1xf32>
      %c0_35 = arith.constant 0 : index
      %c0_36 = arith.constant 0 : index
      %71 = vector.load %arg9[%c0_35, %c0_36] : memref<1x1xf32, #tpu.memory_space<vmem>>, vector<1x1xf32>
      tpu.vector_store %arg9[%c0_35, %c0_36], %70 {strides = array<i32>} : memref<1x1xf32, #tpu.memory_space<vmem>>, vector<1x1xf32>,
    } else {
    }
    return
  }
  func.func @transform_0(%arg0: i32) -> (i32, i32) {
    %c0_i32 = arith.constant 0 : i32
    %c0_i32_0 = arith.constant 0 : i32
    return %arg0, %c0_i32 : i32, i32
  }
  func.func @transform_1(%arg0: i32) -> (i32, i32) {
    %c0_i32 = arith.constant 0 : i32
    %c0_i32_0 = arith.constant 0 : i32
    return %arg0, %c0_i32 : i32, i32
  }
  func.func @transform_2(%arg0: i32) -> (i32, i32) {
    %c0_i32 = arith.constant 0 : i32
    %c0_i32_0 = arith.constant 0 : i32
    return %arg0, %c0_i32 : i32, i32
  }
  func.func @transform_3(%arg0: i32) -> (i32, i32) {
    %c0_i32 = arith.constant 0 : i32
    %c0_i32_0 = arith.constant 0 : i32
    return %arg0, %c0_i32 : i32, i32
  }
  func.func @transform_4(%arg0: i32) -> (i32, i32) {
    %c0_i32 = arith.constant 0 : i32
    %c0_i32_0 = arith.constant 0 : i32
    return %arg0, %c0_i32 : i32, i32
  }
  func.func @transform_5(%arg0: i32) -> (i32, i32) {
    %c0_i32 = arith.constant 0 : i32
    %c0_i32_0 = arith.constant 0 : i32
    %c0_i32_1 = arith.constant 0 : i32
    return %c0_i32, %c0_i32_0 : i32, i32
  }
  func.func @transform_6(%arg0: i32) -> (i32, i32) {
    %c0_i32 = arith.constant 0 : i32
    %c0_i32_0 = arith.constant 0 : i32
    %c0_i32_1 = arith.constant 0 : i32
    return %c0_i32, %c0_i32_0 : i32, i32
  }
  func.func @transform_7(%arg0: i32) -> (i32, i32) {
    %c0_i32 = arith.constant 0 : i32
    %c0_i32_0 = arith.constant 0 : i32
    %c0_i32_1 = arith.constant 0 : i32
    return %c0_i32, %c0_i32_0 : i32, i32
  }
  func.func @transform_8(%arg0: i32) -> (i32, i32) {
    %c0_i32 = arith.constant 0 : i32
    %c0_i32_0 = arith.constant 0 : i32
    %c0_i32_1 = arith.constant 0 : i32
    return %c0_i32, %c0_i32_0 : i32, i32
  }
}

</mosaic_0001>

<bundles_post_ra>
// kernel: tpu_custom_call.1
= control target key start
LH: loop header
LB: loop body
LE: loop exit
PB: predicated region body
PF: predicated region fallthrough
CT: control target
= control target key end

     0   :  { %s1668_s0 = inlined_call_operand.vmem [shape: f32[32,16], index: 0, kind: input, shape index: {}]   ;;  %s1669_s1 = inlined_call_operand.vmem [shape: s32[32,1], index: 1, kind: input, shape index: {}]   ;;  %s1670_s2 = inlined_call_operand.vmem [shape: f32[32,3], index: 2, kind: input, shape index: {}]   ;;  %s1671_s3 = inlined_call_operand.hbm [shape: f32[32,256], index: 3, kind: input, shape index: {}]   ;;  %s1672_s4 = inlined_call_operand.hbm [shape: f32[32,128], index: 4, kind: input, shape index: {}]   ;;  %s1673_s5 = inlined_call_operand.vmem [shape: bf16[256,128], index: 5, kind: input, shape index: {}]   ;;  %s1674_s6 = inlined_call_operand.vmem [shape: f32[1,128], index: 6, kind: input, shape index: {}]   ;;  %s1675_s7 = inlined_call_operand.hbm [shape: f32[128,128], index: 7, kind: input, shape index: {}]   ;;  %s1676_s8 = inlined_call_operand.hbm [shape: f32[1,1], index: 8, kind: output, shape index: {}]  }
   0x1   :  { %1680 = sst [smem:[#allocation14_spill]] %s1671_s3 }
   0x2   :  { %13 = vsyncpa [#allocation4], 0 }
   0x3   :  { %15 = vsyncpa [#allocation4 + $0x1], 0 }
   0x4   :  { %16 = vsyncpa [#allocation7], 0 }
   0x5   :  { %18 = vsyncpa [#allocation7 + $0x1], 0 }
   0x6   :  { %19 = vsyncpa [#allocation5], 0  ;;  %s1361_s27 = smov 0   ;;  %s1363_s28 = smov 0  }
   0x7   :  { %s1365_s29 = smov 0   ;;  %s1367_s30 = smov 0  }
   0x8 LB: > { %s1380_s9 = sadd.s32 4294967295, %s1301_s30   ;;  %p123_p0 = scmp.ne.s32.totalorder %s1293_s28, %s1289_s27  ;;  %s1301_s30 = sphi %s1367_s30, %s1694_s30   ;;  %s1297_s29 = sphi %s1365_s29, %s1693_s29   ;;  %s1293_s28 = sphi %s1363_s28, %s1692_s28   ;;  %s1289_s27 = sphi %s1361_s27, %s1691_s27  }
   0x9   : > { %p1677_p1 = scmp.eq.s32.totalorder %s1380_s9, 0  ;;  %p906_p2 = scmp.ge.s32.totalorder %s1301_s30, 1 }
   0xa   : > { %p244_p3 = scmp.lt.s32.totalorder %s1301_s30, 5  ;;  %s1303_s12 = smov [#allocation8]  }
   0xb   : > { %p1389_p5 = por %p1677_p1, %p123_p0  ;;  %s262_s13 = sshll.u32 %s1303_s12, 4  ;;  %s263_s13 = int_to_ptr.vmem [resolvable:$true] %s262_s13 }
   0xc   : > { %p1393_p6 = pnand %p906_p2, %p244_p3  ;;  %s1406_s15 = sadd.s32 1, %s1301_s30  }
   0xd   : > { %s1681_s10 = scalar_select %p1389_p5, 1, 0 }
   0xe   : > { %s1682_s11 = scalar_select %p1393_p6, 1, 0 }
   0xf   : > { %p1060_p7 = pneg %p1393_p6  ;;  %s110_s16 = sadd.s32 1, %s1297_s29 }
  0x10   : > { %s107_s17 = ssub.s32 %s1301_s30, %s1406_s15  ;;  %s1141_s20 = scalar_lea.hbm %s1675_s7, 2048 }
  0x11   : > { %p1401_p8 = pnand %p1060_p7, %p1677_p1  ;;  %p1142_p9 = scmp.ne.s32.totalorder %s1675_s7, %s1141_s20 }
  0x12   : > { %p1148_p13 = scmp.lt.u32.totalorder %s1141_s20, %s1675_s7 }
  0x13   : > { %p1143_p10 = pneg %p1401_p8 }
  0x15   : > { %p1144_p11 = pnand %p1143_p10, %p1142_p9 }
  0x17   : > { %p1145_p12 = pneg %p1144_p11 }
  0x19   : > { %p1150_p0 = pnand %p1148_p13, %p1145_p12 }
  0x1b   : > { %1153 = shalt.err (!%p1150_p0)
}
  0x1c   : > { %s1154_s25 = scalar_lea.vmem %s263_s13, 2048  ;;  %p1162_p4 = scmp.lt.s32.totalorder %s263_s13, %s263_s13 }
  0x1d   : > { %p1155_p2 = scmp.ne.s32.totalorder %s263_s13, %s1154_s25  ;;  %p1163_p1 = scmp.lt.s32.totalorder %s1154_s25, %s1154_s25 }
  0x1f   : > { %p1157_p3 = pnand %p1155_p2, %p1143_p10  ;;  %p1164_p5 = por %p1163_p1, %p1162_p4 }
  0x21   : > { %p1158_p7 = pneg %p1157_p3 }
  0x23   : > { %p1165_p6 = pnand %p1164_p5, %p1158_p7 }
  0x25   : > { %1168 = shalt.err (!%p1165_p6)
}
  0x26   : > { %s1304_s26 = smov 128   ;;  %s1305_s27 = smov 8  }
  0x27   : > { %1063 = dma.hbm_to_vmem [thread:$0]  (!%p1401_p8), %s1675_s7, 2048, %s263_s13, [#allocation7], %s1304_s26, %s1304_s26, %s1305_s27  }
  0x28   : > { %p108_p9 = scmp.eq.s32.totalorder %s107_s17, 0  ;;  %p117_p1 = scmp.ne.s32.totalorder %s1297_s29, %s1293_s28 }
  0x29   : > { %p118_p4 = scmp.eq.s32.totalorder %s1301_s30, 0  ;;  %p1072_p5 = scmp.lt.s32.totalorder %s1301_s30, 4 }
  0x2a   : > { %s1432_s19 = scalar_select %p108_p9, %s1297_s29, %s110_s16  }
  0x2b   : > { %p119_p6 = por %p118_p4, %p117_p1  ;;  %s1435_s20 = sand.u32 1, %s1297_s29  }
  0x2c   : > { %s909_s21 = sshll.u32 %s1435_s20, 4  ;;  %s945_s22 = sshll.u32 %s1301_s30, 8 }
  0x2d   : > { %s1684_s3 = sld [smem:[#allocation14_spill]]  ;;  %s301_s13 = scalar_lea.vmem [#allocation3], %s909_s21 }
  0x2e   : > { %s309_s16 = sshll.u32 %s301_s13, 4  ;;  %p1446_p8 = pnand %p1072_p5, %p119_p6  ;;  %s1444_s16 = int_to_ptr.vmem [resolvable:$true] %s309_s16 }
  0x2f   : > { %s316_s25 = sand.u32 1, %s1301_s30   ;;  %s912_s26 = sshll.u32 %s1435_s20, 3 }
  0x30   : > { %s298_s27 = scalar_lea.sflag [#allocation4], %s1435_s20  ;;  %p1171_p11 = pneg %p1446_p8 }
  0x33   : > { %s1442_s24 = scalar_lea.hbm %s1684_s3, %s945_s22  ;;  %s1174_s22 = scalar_lea.hbm %s1684_s3, 1024 }
  0x34   : > { %s1169_s12 = scalar_lea.hbm %s1442_s24, 256  ;;  %p1175_p0 = scmp.lt.u32.totalorder %s1442_s24, %s1684_s3 }
  0x35   : > { %p1170_p10 = scmp.ne.s32.totalorder %s1442_s24, %s1169_s12  ;;  %p1176_p2 = scmp.lt.u32.totalorder %s1174_s22, %s1169_s12 }
  0x36   : > { %p1178_p7 = scmp.lt.u32.totalorder %s1169_s12, %s1442_s24 }
  0x37   : > { %p1172_p12 = pnand %p1171_p11, %p1170_p10  ;;  %p1177_p3 = por %p1176_p2, %p1175_p0 }
  0x39   : > { %p1173_p13 = pneg %p1172_p12  ;;  %p1179_p9 = por %p1178_p7, %p1177_p3 }
  0x3b   : > { %p1180_p1 = pnand %p1179_p9, %p1173_p13 }
  0x3d   : > { %1183 = shalt.err (!%p1180_p1)
}
  0x3e   : > { %s1184_s13 = scalar_lea.vmem %s1444_s16, 256  ;;  %s1306_s18 = smov [#allocation3]  }
  0x3f   : > { %p1185_p4 = scmp.ne.s32.totalorder %s1444_s16, %s1184_s13  ;;  %s1189_s21 = sshll.u32 %s1306_s18, 4  ;;  %s1190_s21 = int_to_ptr.vmem [resolvable:$false] %s1189_s21 }
  0x40   : > { %s1191_s14 = scalar_lea.vmem %s1190_s21, 512  ;;  %p1192_p10 = scmp.lt.s32.totalorder %s1444_s16, %s1190_s21 }
  0x41   : > { %p1187_p5 = pnand %p1185_p4, %p1171_p11  ;;  %p1193_p12 = scmp.lt.s32.totalorder %s1191_s14, %s1184_s13 }
  0x43   : > { %p1188_p6 = pneg %p1187_p5  ;;  %p1194_p0 = por %p1193_p12, %p1192_p10 }
  0x45   : > { %p1195_p2 = pnand %p1194_p0, %p1188_p6 }
  0x47   : > { %1198 = shalt.err (!%p1195_p2)
}
  0x48   : > { %1067 = dma.hbm_to_vmem [thread:$0]  (!%p1446_p8), %s1442_s24, 256, %s1444_s16, %s298_s27  }
  0x49   : > { %s913_s12 = sshll.u32 %s1301_s30, 7  ;;  %s320_s13 = scalar_lea.vmem [#allocation6], %s912_s26 }
  0x4a   : > { %s1482_s18 = scalar_lea.hbm %s1672_s4, %s913_s12  ;;  %s327_s21 = sshll.u32 %s320_s13, 4  ;;  %s328_s21 = int_to_ptr.vmem [resolvable:$true] %s327_s21 }
  0x4b   : > { %s317_s14 = scalar_lea.sflag [#allocation7], %s316_s25  ;;  %s1199_s3 = scalar_lea.hbm %s1482_s18, 128 }
  0x4c   : > { %p1200_p13 = scmp.ne.s32.totalorder %s1482_s18, %s1199_s3  ;;  %s1204_s27 = scalar_lea.hbm %s1672_s4, 512 }
  0x4d   : > { %p1205_p9 = scmp.lt.u32.totalorder %s1482_s18, %s1672_s4  ;;  %p1206_p1 = scmp.lt.u32.totalorder %s1204_s27, %s1199_s3 }
  0x4e   : > { %p1202_p3 = pnand %p1200_p13, %p1171_p11  ;;  %p1208_p5 = scmp.lt.u32.totalorder %s1199_s3, %s1482_s18 }
  0x4f   : > { %p1207_p4 = por %p1206_p1, %p1205_p9 }
  0x50   : > { %p1203_p7 = pneg %p1202_p3 }
  0x51   : > { %p1209_p6 = por %p1208_p5, %p1207_p4 }
  0x53   : > { %p1210_p10 = pnand %p1209_p6, %p1203_p7 }
  0x55   : > { %1213 = shalt.err (!%p1210_p10)
}
  0x56   : > { %s1214_s30 = scalar_lea.vmem %s328_s21, 128  ;;  %s1307_s25 = smov [#allocation6]  }
  0x57   : > { %p1215_p12 = scmp.ne.s32.totalorder %s328_s21, %s1214_s30  ;;  %s1219_s26 = sshll.u32 %s1307_s25, 4  ;;  %s1220_s26 = int_to_ptr.vmem [resolvable:$false] %s1219_s26 }
  0x58   : > { %s1221_s22 = scalar_lea.vmem %s1220_s26, 256  ;;  %p1222_p13 = scmp.lt.s32.totalorder %s328_s21, %s1220_s26 }
  0x59   : > { %p1217_p0 = pnand %p1215_p12, %p1171_p11  ;;  %p1223_p3 = scmp.lt.s32.totalorder %s1221_s22, %s1214_s30 }
  0x5b   : > { %p1218_p2 = pneg %p1217_p0  ;;  %p1224_p1 = por %p1223_p3, %p1222_p13 }
  0x5d   : > { %p1225_p9 = pnand %p1224_p1, %p1218_p2 }
  0x5f   : > { %1228 = shalt.err (!%p1225_p9)
}
  0x60   : > { %1070 = dma.hbm_to_vmem [thread:$0]  (!%p1446_p8), %s1482_s18, 128, %s328_s21, %s317_s14  }
  0x61   : > { %p1686_p7 = scmp.ne.s32.totalorder %s1682_s11, 0 }
  0x62   : > { %s338_s3 = sand.u32 (!%p1686_p7), 1, %s1293_s28   ;;  %p1687_p11 = scmp.ne.s32.totalorder (!%p1686_p7), %s1681_s10, 0 }
  0x63   : > { %336 = sbr.rel (%p1686_p7) target bundleno = 1133 (0x46d), region = 52  ;;  %s915_s23 = sshll.u32 (!%p1686_p7), %s338_s3, 4 }
  0x64   : > { %s339_s13 = scalar_lea.sflag (!%p1686_p7), [#allocation4], %s338_s3  ;;  %s1510_s24 = scalar_lea.vmem (!%p1686_p7), [#allocation3], %s915_s23 }
  0x6a   : > { %1272 = dma.done.wait (%p1687_p11), %s339_s13, 256  }
  0x6b   : > { %1274 = vsyncadd (%p1687_p11), %s339_s13, 4294967040  ;;  %s347_s17 = sand.u32 1, %s1380_s9   ;;  %s916_s16 = sshll.u32 %s338_s3, 3 }
  0x6c   : > { %s348_s18 = scalar_lea.sflag [#allocation7], %s347_s17  ;;  %s1517_s21 = scalar_lea.vmem [#allocation6], %s916_s16 }
  0x6d   : > { %1276 = dma.done.wait (%p1687_p11), %s348_s18, 128  }
  0x6e   : > { %1278 = vsyncadd (%p1687_p11), %s348_s18, 4294967168  ;;  %p1688_p8 = scmp.eq.s32.totalorder %s1380_s9, 0 }
  0x70   : > { %1280 = dma.done.wait (%p1688_p8), [#allocation7], 2048   ;;  %p1689_p4 = pmov %p1688_p8 }
  0x71   : > { %p400_p5 = scmp.lt.s32.totalorder %s1380_s9, 3  ;;  %p1690_p6 = scmp.ne.s32.totalorder %s1380_s9, 0 }
  0x72   : > { %1282 = vsyncadd (%p1689_p4), [#allocation7], 4294965248  ;;  %vm417_vm0 = vcmask (!%p1690_p6), 0   ;;  %v1308_v0 = vmov (!%p1690_p6), 0.0  }
  0x73   : > { %s401_s11 = scalar_select %p400_p5, %s1380_s9, 3 }
  0x74   : > { %416 = sbr.rel (%p1690_p6) target bundleno = 123 (0x7b), region = 68  ;;  %418 = vst.msk [vmem:[#allocation2] sm:$0x1] (!%p1690_p6), %vm417_vm0, %v1308_v0 }
  0x75   : > { %s1529_s14 = sshll.u32 %s401_s11, 3 }
  0x76   : > { %s403_s10 = scalar_lea.vmem %s1668_s0, %s1529_s14  ;;  %s407_s25 = scalar_lea.vmem %s1669_s1, %s1529_s14 }
  0x77   : > { %s411_s3 = scalar_lea.vmem %s1670_s2, %s1529_s14 }
  0x7b PF: > { %v1121_v1 = vld [vmem:[%s1673_s5 + $0x40] sm:$0xff]   ;;  %v1309_v3 = vmov 0   ;;  %v1123_v4 = vld [vmem:[%s1673_s5 + $0x48] sm:$0xff]   ;;  %v1310_v5 = vmov 0.0|0.0   ;;  %v1125_v7 = vld [vmem:[%s1673_s5 + $0x50] sm:$0xff]   ;;  %vm1311_vm1 = vmmov 0  }
  0x7c   : > { %v1122_v2 = vld [vmem:[%s1673_s5] sm:$0xff]   ;;  %1119 = vset.pattern.permute.xlu0 %v1309_v3  ;;  %1120 = vset.pattern.permute.xlu1 %v1309_v3  ;;  %v1124_v6 = vld [vmem:[%s1673_s5 + $0x8] sm:$0xff]   ;;  %v1126_v8 = vld [vmem:[%s1673_s5 + $0x10] sm:$0xff]   ;;  %v1312_v42 = vmov 0.0   ;;  %v422_v3 = vlaneseq  ;;  %vm429_vm2 = vcmask 130048   ;;  %s1313_s23 = smov 127  }
  0x7d   : > { %946 = vmatprep.subr.bf16.mxu0 %v1121_v1  ;;  %1020 = vmatprep.subr.bf16.mxu1 %v1310_v5  ;;  %v1127_v9 = vld [vmem:[%s1673_s5 + $0x58] sm:$0xff]   ;;  %v1129_v11 = vld [vmem:[%s1673_s5 + $0x60] sm:$0xff]   ;;  %v1131_v13 = vld [vmem:[%s1673_s5 + $0x68] sm:$0xff]   ;;  %vm444_vm4 = vcmask 7168   ;;  %s1314_s14 = smov 126   ;;  %vm771_vm7 = vcmask 0  }
  0x7e   : > { %947 = vmatpush3.bf16.msra.mxu0 %v1122_v2  ;;  %v1128_v10 = vld [vmem:[%s1673_s5 + $0x18] sm:$0xff]   ;;  %v1130_v12 = vld [vmem:[%s1673_s5 + $0x20] sm:$0xff]   ;;  %v656_v22 = vld [vmem:[#allocation8 + $0x18] sm:$0xff]  ;;  %1017 = vmatprep.mubr.msk.f32.mxu1 %vm1311_vm1, %v1312_v42  ;;  %p940_p10 = scmp.ne.s32.totalorder %s1380_s9, 3 }
  0x7f   : > { %948 = vmatprep.subr.bf16.mxu0 %v1123_v4  ;;  %v457_v14 = vld [vmem:[%s1510_s24 + $0x8] sm:$0xff]  ;;  %v653_v18 = vld [vmem:[#allocation8] sm:$0xff]  ;;  %v655_v20 = vld [vmem:[#allocation8 + $0x10] sm:$0xff] }
  0x80   : > { %v1585_v15 = vld [vmem:[%s411_s3] sm:$0xff]  ;;  %v459_v16 = vpack.c.bf16 %v457_v14, %v457_v14  ;;  %v1132_v23 = vld [vmem:[%s1673_s5 + $0x28] sm:$0xff]   ;;  %v1133_v24 = vld [vmem:[%s1673_s5 + $0x70] sm:$0xff]   ;;  %v1024_v25 = vpack.c.bf16 %v656_v22, %v655_v20 }
  0x81   : > { %629 = vperm.xlu0 %1119, %v1585_v15   ;;  %v633_v17 = vsub.f32 1.0, %v1585_v15  ;;  %v654_v19 = vld [vmem:[#allocation8 + $0x8] sm:$0xff]  ;;  %v1134_v26 = vld [vmem:[%s1673_s5 + $0x30] sm:$0xff]   ;;  %v659_v34 = vld [vmem:[#allocation8 + $0x30] sm:$0xff] }
  0x82   : > { %949 = vmatpush3.bf16.msra.mxu0 %v1124_v6  ;;  %v1021_v21 = vpack.c.bf16 %v654_v19, %v653_v18  ;;  %620 = vmatprep.mubr.bf16.mxu0 %v459_v16  ;;  %v1135_v27 = vld [vmem:[%s1673_s5 + $0x78] sm:$0xff]   ;;  %v660_v35 = vld [vmem:[#allocation8 + $0x38] sm:$0xff]  ;;  %v663_v40 = vld [vmem:[#allocation8 + $0x50] sm:$0xff] }
  0x83   : > { %950 = vmatprep.subr.bf16.mxu0 %v1125_v7  ;;  %v1136_v28 = vld [vmem:[%s1673_s5 + $0x38] sm:$0xff]   ;;  %v1030_v36 = vpack.c.bf16 %v660_v35, %v659_v34  ;;  %v664_v41 = vld [vmem:[#allocation8 + $0x58] sm:$0xff]  ;;  %v667_v47 = vld [vmem:[#allocation8 + $0x70] sm:$0xff] }
  0x84   : > { %1022 = vmatpush3.bf16.msra.mxu1 %v1021_v21  ;;  %v456_v29 = vld [vmem:[%s1510_s24] sm:$0xff]  ;;  %v658_v32 = vld [vmem:[#allocation8 + $0x28] sm:$0xff]  ;;  %v1036_v43 = vpack.c.bf16 %v664_v41, %v663_v40  ;;  %v668_v48 = vld [vmem:[#allocation8 + $0x78] sm:$0xff] }
  0x85   : > { %637 = vperm.xlu0 %1119, %v633_v17   ;;  %1023 = vmatprep.subr.bf16.mxu1 %v1310_v5  ;;  %v458_v30 = vpack.c.bf16 %v456_v29, %v456_v29  ;;  %v657_v31 = vld [vmem:[#allocation8 + $0x20] sm:$0xff]  ;;  %v662_v38 = vld [vmem:[#allocation8 + $0x48] sm:$0xff]  ;;  %v1042_v49 = vpack.c.bf16 %v668_v48, %v667_v47  ;;  %v634_v53 = vld [vmem:[%s1517_s21] sm:$0xff] }
  0x86   : > { %951 = vmatpush3.bf16.msra.mxu0 %v1126_v8  ;;  %v1027_v33 = vpack.c.bf16 %v658_v32, %v657_v31  ;;  %v661_v37 = vld [vmem:[#allocation8 + $0x40] sm:$0xff]  ;;  %v666_v45 = vld [vmem:[#allocation8 + $0x68] sm:$0xff] }
  0x87   : > { %952 = vmatprep.subr.bf16.mxu0 %v1127_v9  ;;  %v1033_v39 = vpack.c.bf16 %v662_v38, %v661_v37  ;;  %v665_v44 = vld [vmem:[#allocation8 + $0x60] sm:$0xff]  ;;  %v420_v50 = vld [vmem:[%s407_s25] sm:$0xff] }
  0x88   : > { %1025 = vmatpush3.bf16.msra.mxu1 %v1024_v25  ;;  %v1039_v46 = vpack.c.bf16 %v666_v45, %v665_v44  ;;  %425 = vperm.xlu1 %1120, %v420_v50   ;;  %v938_v0 = vld [vmem:[%s1674_s6] ss:$0 sm:$0xff] }
  0x89   : > { %1026 = vmatprep.subr.bf16.mxu1 %v1310_v5  ;;  %v419_v6 = vld [vmem:[%s403_s10] sm:$0xff] }
  0x8a   : > { %953 = vmatpush3.bf16.msra.mxu0 %v1128_v10  ;;  %v768_v47 = vld [vmem:[#allocation2] sm:$0x1] }
  0x8b   : > { %954 = vmatprep.subr.bf16.mxu0 %v1129_v11 }
  0x8c   : > { %1028 = vmatpush3.bf16.msra.mxu1 %v1027_v33 }
  0x8d   : > { %1029 = vmatprep.subr.bf16.mxu1 %v1310_v5 }
  0x8e   : > { %955 = vmatpush3.bf16.msra.mxu0 %v1130_v12 }
  0x8f   : > { %956 = vmatprep.subr.bf16.mxu0 %v1131_v13 }
  0x90   : > { %1031 = vmatpush3.bf16.msra.mxu1 %v1030_v36 }
  0x91   : > { %1032 = vmatprep.subr.bf16.mxu1 %v1310_v5 }
  0x92   : > { %957 = vmatpush3.bf16.msra.mxu0 %v1132_v23 }
  0x93   : > { %958 = vmatprep.subr.bf16.mxu0 %v1133_v24 }
  0x94   : > { %1034 = vmatpush3.bf16.msra.mxu1 %v1033_v39 }
  0x95   : > { %1035 = vmatprep.subr.bf16.mxu1 %v1310_v5 }
  0x96   : > { %959 = vmatpush3.bf16.msra.mxu0 %v1134_v26 }
  0x97   : > { %960 = vmatprep.subr.bf16.mxu0 %v1135_v27 }
  0x98   : > { %1037 = vmatpush3.bf16.msra.mxu1 %v1036_v43 }
  0x99   : > { %1038 = vmatprep.subr.bf16.mxu1 %v1310_v5 }
  0x9a   : > { %961 = vmatpush3.bf16.msra.mxu0 %v1136_v28 }
  0x9c   : > { %1040 = vmatpush3.bf16.msra.mxu1 %v1039_v46 }
  0x9d   : > { %621 = vmatmul.mubr.bf16.vlgmr.msra.gmra.mrb[0].mxu0 %v458_v30  ;;  %1041 = vmatprep.subr.bf16.mxu1 %v1310_v5  ;;  %v423_v5 = vand.u32 127, %v422_v3 }
  0xa0   : > { %1043 = vmatpush3.bf16.msra.mxu1 %v1042_v49 }
 0x100   : > { %v630_v51 = vpop.permute.xlu0 %629 }
 0x104   : > { %v638_v54 = vpop.permute.xlu0 %637 }
 0x105   : > { %v640_v59 = vmul.f32 %v638_v54, %v634_v53 }
 0x107   : > { %v426_v4 = vpop.permute.xlu1 %425 }
 0x108   : > { %vm427_vm3 = vcmp.eq.s32.totalorder %v423_v5, %v426_v4 }
 0x109   : > { %v428_v7 = vsel %vm427_vm3, %v419_v6, 0.0 }
 0x10a   : > { %v430_v8 = vsel %vm429_vm2, %v428_v7, 0.0 }
 0x10b   : > { %431 = vadd.xlane.f32.xlu0 %v430_v8 }
 0x121   : > { %436 = vrot.lane.b32.xlu0 %v1585_v15, %s1313_s23 }
 0x170   : > { %v962_v52 = vpop.f32.mrb[0].mxu0 }
 0x171   : > { %v963_v55 = vpop.f32.mrb[1].mxu0 }
 0x172   : > { %v964_v56 = vadd.f32 %v963_v55, %v962_v52  ;;  %v965_v57 = vpop.f32.mrb[2].mxu0 }
 0x173   : > { %v966_v58 = vpop.f32.mrb[3].mxu0 }
 0x174   : > { %v632_v60 = vmul.f32 %v964_v56, %v630_v51 }
 0x176   : > { %v641_v61 = vadd.f32 %v640_v59, %v632_v60 }
 0x178   : > { %1137 = vtanh.f32 %v641_v61 }
 0x182   : > { %v1138_v62 = vpop.eup %1137 }
 0x183   : > { %v643_v63 = vmul.f32 %v1138_v62, %v1138_v62 }
 0x185   : > { %v644_v1 = vsub.f32 1.0, %v643_v63 }
 0x187   : > { %v652_v2 = vmul.f32 %v938_v0, %v644_v1 }
 0x189   : > { %1018 = vmatmul.mubr.f32.vlgmr.msra.gmra.mrb[0].mxu1 %v652_v2 }
 0x198   : > { %v432_v12 = vpop.xlane.xlu0 %431 }
 0x199   : > { %v433_v13 = vsub.f32 0.0, %v432_v12 }
 0x19b   : > { %v434_v14 = vmul.f32 %v433_v13, %v1585_v15 }
 0x19c   : > { %v437_v16 = vpop.permute.xlu0 %436 }
 0x19d   : > { %v439_v17 = vmul.f32 %v437_v16, %v434_v14 }
 0x25c   : > { %v735_v9 = vpop.f32.mrb[0].mxu1 }
 0x25d   : > { %v739_v10 = vmul.f32 %v735_v9, %v652_v2  ;;  %v1019_v11 = vpop.f32.mrb[1].mxu1 }
 0x25f   : > { %740 = vadd.xlane.f32.xlu1 %v739_v10 }
 0x270   : > { %441 = vrot.lane.b32.xlu1 %v439_v17, %s1313_s23 }
 0x2ec   : > { %v741_v18 = vpop.xlane.xlu1 %740 }
 0x2ed   : > { %v742_v19 = vmax.f32 %v741_v18, 0.0 }
 0x2ef   : > { %1139 = vrsqrt.f32 %v742_v19  ;;  %vm745_vm5 = vcmp.eq.f32.partialorder %v742_v19, inf  ;;  %v748_v24 = vand.u32 2147483648, %v742_v19  ;;  %vm747_vm6 = vcmp.eq.f32.partialorder %v742_v19, 0.0 }
 0x2f0   : > { %v442_v20 = vpop.permute.xlu1 %441 }
 0x2f1   : > { %v445_v21 = vsel %vm444_vm4, %v442_v20, 0.0 }
 0x2f2   : > { %446 = vadd.xlane.f32.xlu0 %v445_v21 }
 0x2f9   : > { %v1140_v22 = vpop.eup %1139 }
 0x2fa   : > { %v744_v23 = vmul.f32 %v1140_v22, %v742_v19 }
 0x2fc   : > { %v746_v25 = vsel %vm745_vm5, %v742_v19, %v744_v23 }
 0x2fd   : > { %v749_v26 = vsel %vm747_vm6, %v748_v24, %v746_v25 }
 0x2fe   : > { %v939_v27 = vadd.f32 -1.0, %v749_v26 }
 0x300   : > { %v751_v28 = vmul.f32 %v939_v27, %v939_v27 }
 0x302   : > { %v752_v29 = vmul.f32 %v751_v28, %v1585_v15 }
 0x304   : > { %754 = vrot.lane.b32.xlu1 %v752_v29, %s1314_s14 }
 0x376   : > { %v755_v30 = vpop.permute.xlu1 %754 }
 0x377   : > { %v757_v31 = vsel %vm444_vm4, %v755_v30, 0.0 }
 0x378   : > { %758 = vadd.xlane.f32.xlu1 %v757_v31 }
 0x37f   : > { %v447_v32 = vpop.xlane.xlu0 %446 }
 0x380   : > { %v448_v33 = vrot.slane %v447_v32, 4 }
 0x382   : > { %v449_v34 = vadd.f32 %v448_v33, %v447_v32 }
 0x384   : > { %v450_v35 = vrot.slane %v449_v34, 2 }
 0x386   : > { %v451_v36 = vadd.f32 %v450_v35, %v449_v34 }
 0x388   : > { %v452_v37 = vrot.slane %v451_v36, 1 }
 0x38a   : > { %v453_v38 = vadd.f32 %v452_v37, %v451_v36 }
 0x38c   : > { %1044 = vpush %v453_v38 }
 0x3bd   : > { %s1045_s10 = spop %1044 }
 0x3be   : > { %v455_v45 = vstv %s1045_s10 }
 0x405   : > { %v759_v39 = vpop.xlane.xlu1 %758 }
 0x406   : > { %v760_v40 = vrot.slane %v759_v39, 4 }
 0x408   : > { %v761_v41 = vadd.f32 %v760_v40, %v759_v39 }
 0x40a   : > { %v762_v42 = vrot.slane %v761_v41, 2 }
 0x40c   : > { %v763_v43 = vadd.f32 %v762_v42, %v761_v41 }
 0x40e   : > { %v764_v15 = vrot.slane %v763_v43, 1 }
 0x410   : > { %v765_v44 = vadd.f32 %v764_v15, %v763_v43 }
 0x412   : > { %1046 = vpush %v765_v44 }
 0x443   : > { %s1047_s13 = spop %1046  ;;  %776 = sbr.rel (%p940_p10) target bundleno = 1108 (0x454), region = 72 }
 0x444   : > { %v767_v46 = vstv %s1047_s13 }
 0x445   : > { %v769_v48 = vadd.f32 %v767_v46, %v455_v45 }
 0x447   : > { %v770_v49 = vadd.f32 %v769_v48, %v768_v47 }
 0x449   : > { %772 = vst.msk [vmem:[#allocation2] sm:$0x1] %vm771_vm7, %v770_v49 }
 0x450   : > { %v777_v50 = vld [vmem:[#allocation2] sm:$0x1] }
 0x451   : > { %v778_v51 = vmul.f32 0.035714287, %v777_v50 }
 0x453   : > { %779 = vst.msk [vmem:[#allocation9] sm:$0x1] %vm771_vm7, %v778_v51 }
 0x454 PF: > { %p1074_p12 = scmp.eq.s32.totalorder %s1380_s9, 3  ;;  %s1315_s3 = smov [#allocation9]  }
 0x455   : > { %s787_s17 = sshll.u32 %s1315_s3, 4  ;;  %s788_s17 = int_to_ptr.vmem [resolvable:$true] %s787_s17 }
 0x456   : > { %s1229_s16 = scalar_lea.vmem %s788_s17, 16  ;;  %s1235_s18 = scalar_lea.vmem %s788_s17, 32 }
 0x457   : > { %p1230_p0 = scmp.ne.s32.totalorder %s788_s17, %s1229_s16  ;;  %p1236_p3 = scmp.lt.s32.totalorder %s788_s17, %s788_s17 }
 0x458   : > { %p1237_p1 = scmp.lt.s32.totalorder %s1235_s18, %s1229_s16 }
 0x459   : > { %p1231_p2 = pnand %p1230_p0, %p1074_p12 }
 0x45a   : > { %p1238_p9 = por %p1237_p1, %p1236_p3 }
 0x45b   : > { %p1232_p13 = pneg %p1231_p2 }
 0x45d   : > { %p1239_p7 = pnand %p1238_p9, %p1232_p13 }
 0x45f   : > { %1242 = shalt.err (!%p1239_p7)
}
 0x460   : > { %s1243_s20 = scalar_lea.hbm %s1676_s8, 16 }
 0x461   : > { %p1244_p11 = scmp.ne.s32.totalorder %s1676_s8, %s1243_s20  ;;  %p1249_p5 = scmp.lt.u32.totalorder %s1243_s20, %s1676_s8 }
 0x463   : > { %p1245_p8 = pnand %p1244_p11, %p1074_p12 }
 0x465   : > { %p1246_p4 = pneg %p1245_p8 }
 0x467   : > { %p1251_p6 = pnand %p1249_p5, %p1246_p4 }
 0x469   : > { %1254 = shalt.err (!%p1251_p6)
}
 0x46a   : > { %1057 = dma.vmem_to_hbm [thread:$0]  (%p1074_p12), %s788_s17, 16, %s1676_s8, [#allocation5]  }
 0x46b   : > { %1284 = dma.done.wait (%p1074_p12), [#allocation5], 16  }
 0x46c   : > { %1286 = vsyncadd (%p1074_p12), [#allocation5], 4294967280 }
 0x46d PF: > { %p22_p10 = scmp.ge.s32.totalorder %s1406_s15, 6   ;;  %s1691_s27 = smov %s1293_s28 }
 0x46e   : > { %s1692_s28 = smov %s1297_s29  ;;  %s1693_s29 = smov %s1432_s19 }
 0x46f   : > { %s1694_s30 = smov %s1406_s15  ;;  %24 = sbr.rel (!%p22_p10) target bundleno = 8 (0x8), region = 123 }
 0x476   :  { %800 = vsyncpa [#allocation4], 1 }
 0x477   :  { %802 = vsyncpa [#allocation4 + $0x1], 1 }
 0x478   :  { %803 = vsyncpa [#allocation7], 1 }
 0x479   :  { %805 = vsyncpa [#allocation7 + $0x1], 1 }
 0x47a   :  { %806 = vsyncpa [#allocation5], 1 }
 0x47b   :  { %808 = vsyncpa [#allocation5 + $0x1], 1 }

</bundles_post_ra>
